<compile_context>
chip_gen: v7x
topology: tpu7x:2x2x1
jax: 0.10.0
libtpu: 0.0.40
codegen_flags: <defaults>
</compile_context>

<pallas_src>
import functools

import jax
import jax.numpy as jnp
from jax.experimental import pallas as pl
from jax.experimental.pallas import tpu as pltpu

ALPHA = 0.25
GAMMA = 2.0
_LANES = 128
_PAD_LOGIT = 100.0   # sigmoid(100) == 1.0 exactly in f32 -> padded loss == 0
_PAD_TARGET = 1.0


def _focal_loss_kernel(x_ref, t_ref, out_ref, acc_ref, *, alpha, gamma, tile_rows):
    k = pl.program_id(1)  # sequential reduction axis

    @pl.when(k == 0)
    def _():
        acc_ref[...] = jnp.zeros_like(acc_ref)

    x = x_ref[...].astype(jnp.float32)
    t = t_ref[...].astype(jnp.float32)

    # Numerically stable BCE-with-logits fused with sigmoid (one exp total):
    #   e  = exp(-|x|)
    #   ce = max(x, 0) - x*t + log1p(e)
    #   sigmoid(x) = 1/(1+e)   if x >= 0
    #              = e/(1+e)   if x <  0
    e = jnp.exp(-jnp.abs(x))
    ce = jnp.maximum(x, 0.0) - x * t + jnp.log1p(e)
    d = 1.0 / (1.0 + e)
    p = jnp.where(x >= 0.0, d, e * d)

    # u = 1 - p_t with p_t = p*t + (1-p)*(1-t)  ==>  u = p + t - 2*p*t
    u = p + t - 2.0 * p * t
    if gamma == 2.0:
        mod = u * u                      # static: avoid pow -> exp(log(.)) on EUP
    else:
        mod = u ** gamma
    loss = ce * mod
    if alpha >= 0:
        # alpha_t = alpha*t + (1-alpha)*(1-t) = (1-alpha) + (2*alpha-1)*t
        loss = ((1.0 - alpha) + (2.0 * alpha - 1.0) * t) * loss

    # vreg-shaped accumulation: VPU-only adds per grid step; the final
    # cross-lane/sublane reduction happens once on the tiny output outside.
    acc_ref[...] += loss.reshape(tile_rows // 8, 8, _LANES).sum(axis=0)

    @pl.when(k == pl.num_programs(1) - 1)
    def _():
        out_ref[0] = acc_ref[...]


def focal_loss(classifications, targets, alpha=ALPHA, gamma=GAMMA,
               reduce='mean', tile_rows=2048, num_splits=2):
    """Pallas focal loss. classifications/targets: any shape; returns scalar f32."""
    if reduce not in ('mean', 'sum'):
        raise ValueError('reduce type is wrong!')
    assert classifications.shape == targets.shape

    total = classifications.size
    rows_total = pl.cdiv(total, _LANES)
    if rows_total <= tile_rows:
        num_splits = 1                                # tiny problem: one split
    rows_per_split = pl.cdiv(rows_total, num_splits)
    # Tile rows are a multiple of 16 so the block respects bf16 (16,128) sublane
    # packing as well as the 8-row vreg reshape used for accumulation.
    rows_per_tile = min(tile_rows, max(16, rows_per_split))
    rows_per_tile = ((rows_per_tile + 15) // 16) * 16
    n_chunks = pl.cdiv(rows_total, num_splits * rows_per_tile)
    padded_total = num_splits * n_chunks * rows_per_tile * _LANES

    x = classifications.reshape(-1)
    t = targets.reshape(-1)
    pad = padded_total - total
    if pad:
        # Padding (x=+100, t=1) contributes exactly 0 to the loss in f32, so the
        # kernel needs no tail masking and sum/mean denominators stay exact.
        x = jnp.pad(x, (0, pad), constant_values=_PAD_LOGIT)
        t = jnp.pad(t, (0, pad), constant_values=_PAD_TARGET)
    x = x.reshape(padded_total // _LANES, _LANES)
    t = t.reshape(padded_total // _LANES, _LANES)

    kernel = functools.partial(_focal_loss_kernel, alpha=alpha, gamma=gamma,
                               tile_rows=rows_per_tile)

    cost = pl.CostEstimate(
        flops=15 * padded_total,
        transcendentals=3 * padded_total,
        bytes_accessed=padded_total * (x.dtype.itemsize + t.dtype.itemsize)
        + num_splits * 8 * _LANES * 4)

    partials = pl.pallas_call(
        kernel,
        out_shape=jax.ShapeDtypeStruct((num_splits, 8, _LANES), jnp.float32),
        grid_spec=pltpu.PrefetchScalarGridSpec(
            num_scalar_prefetch=0,
            grid=(num_splits, n_chunks),
            in_specs=[
                pl.BlockSpec((rows_per_tile, _LANES),
                             lambda p, k: (p * n_chunks + k, 0)),
                pl.BlockSpec((rows_per_tile, _LANES),
                             lambda p, k: (p * n_chunks + k, 0)),
            ],
            out_specs=pl.BlockSpec((1, 8, _LANES), lambda p, k: (p, 0, 0)),
            scratch_shapes=[pltpu.VMEM((8, _LANES), jnp.float32)],
        ),
        compiler_params=pltpu.CompilerParams(
            dimension_semantics=("parallel", "arbitrary")),
        cost_estimate=cost,
    )(x, t)

    total_sum = jnp.sum(partials)
    if reduce == 'mean':
        return total_sum / jnp.float32(total)
    return total_sum


def focal_loss_ref(classifications, targets, alpha=ALPHA, gamma=GAMMA,
                   reduce='mean'):
    x = classifications.astype(jnp.float32)
    t = targets.astype(jnp.float32)
    ce = jnp.maximum(x, 0.0) - x * t + jnp.log1p(jnp.exp(-jnp.abs(x)))
    p = jax.nn.sigmoid(x)
    p_t = p * t + (1 - p) * (1 - t)
    loss = ce * (1 - p_t) ** gamma
    alpha_t = alpha * t + (1 - alpha) * (1 - t)
    loss = alpha_t * loss
    return jnp.sum(loss) if reduce == 'sum' else jnp.mean(loss)


if __name__ == "__main__":
    key = jax.random.PRNGKey(0)
    k1, k2 = jax.random.split(key)

    # Small classification-head-like shapes: 32 examples x 128 binary labels.
    N, C = 32, 128
    classifications = jax.random.normal(k1, (N, C), dtype=jnp.float32) * 2.0
    targets = (jax.random.uniform(k2, (N, C)) > 0.5).astype(jnp.float32)

    loss = jax.block_until_ready(focal_loss(classifications, targets))
    ref = focal_loss_ref(classifications, targets)
    assert jnp.allclose(loss, ref, rtol=5e-5, atol=1e-6), (loss, ref)

    # Padded / ragged path (total not a multiple of a 128-lane row).
    N2, C2 = 37, 10
    c2 = jax.random.normal(k1, (N2, C2), dtype=jnp.float32)
    t2 = (jax.random.uniform(k2, (N2, C2)) > 0.5).astype(jnp.float32)
    loss2 = jax.block_until_ready(focal_loss(c2, t2))
    ref2 = focal_loss_ref(c2, t2)
    assert jnp.allclose(loss2, ref2, rtol=5e-5, atol=1e-6), (loss2, ref2)

    # 'sum' reduction path.
    loss3 = jax.block_until_ready(focal_loss(classifications, targets, reduce='sum'))
    ref3 = focal_loss_ref(classifications, targets, reduce='sum')
    assert jnp.allclose(loss3, ref3, rtol=1e-4, atol=1e-4), (loss3, ref3)

    print("KERNEL_OK")
</pallas_src>

<mosaic_0001>
module attributes {stable_mosaic.version = 11 : i64} {
  func.func @_focal_loss_kernel(%arg0: i32, %arg1: i32, %arg2: memref<32x128xf32, #tpu.memory_space<vmem>>, %arg3: memref<32x128xf32, #tpu.memory_space<vmem>>, %arg4: memref<1x8x128xf32, #tpu.memory_space<vmem>>, %arg5: memref<8x128xf32, #tpu.memory_space<vmem>>) attributes {dimension_semantics = [#tpu.dimension_semantics<parallel>, #tpu.dimension_semantics<arbitrary>], iteration_bounds = array<i64: 1, 1>, scalar_prefetch = 0 : i64, scratch_operands = 1 : i64, tpu.core_type = #tpu.core_type<tc>, window_params = [{transform_indices = @transform_0, window_bounds = array<i64: 32, 128>}, {transform_indices = @transform_1, window_bounds = array<i64: 32, 128>}, {transform_indices = @transform_2, window_bounds = array<i64: 1, 8, 128>}]} {
    %c0_i32 = arith.constant 0 : i32
    %0 = arith.cmpi eq, %arg1, %c0_i32 : i32
    %1 = arith.extui %0 : i1 to i32
    %c0_i32_0 = arith.constant 0 : i32
    %2 = arith.cmpi ne, %1, %c0_i32_0 : i32
    scf.if %2 {
      %cst_18 = arith.constant 0.000000e+00 : f32
      %43 = vector.broadcast %cst_18 : f32 to vector<8x128xf32>
      %c0_19 = arith.constant 0 : index
      %c0_20 = arith.constant 0 : index
      %44 = vector.load %arg5[%c0_19, %c0_20] : memref<8x128xf32, #tpu.memory_space<vmem>>, vector<8x128xf32>
      tpu.vector_store %arg5[%c0_19, %c0_20], %43 {strides = array<i32>} : memref<8x128xf32, #tpu.memory_space<vmem>>, vector<8x128xf32>,
    } else {
    }
    %c0 = arith.constant 0 : index
    %c0_1 = arith.constant 0 : index
    %3 = vector.load %arg2[%c0, %c0_1] : memref<32x128xf32, #tpu.memory_space<vmem>>, vector<32x128xf32>
    %c0_2 = arith.constant 0 : index
    %c0_3 = arith.constant 0 : index
    %4 = vector.load %arg3[%c0_2, %c0_3] : memref<32x128xf32, #tpu.memory_space<vmem>>, vector<32x128xf32>
    %5 = math.absf %3 : vector<32x128xf32>
    %cst = arith.constant 0.000000e+00 : f32
    %6 = vector.broadcast %cst : f32 to vector<32x128xf32>
    %7 = arith.subf %6, %5 : vector<32x128xf32>
    %8 = math.exp %7 : vector<32x128xf32>
    %cst_4 = arith.constant 0.000000e+00 : f32
    %9 = vector.broadcast %cst_4 : f32 to vector<32x128xf32>
    %10 = arith.maximumf %3, %9 : vector<32x128xf32>
    %11 = arith.mulf %3, %4 : vector<32x128xf32>
    %12 = arith.subf %10, %11 : vector<32x128xf32>
    %13 = math.log1p %8 : vector<32x128xf32>
    %14 = arith.addf %12, %13 : vector<32x128xf32>
    %cst_5 = arith.constant 1.000000e+00 : f32
    %15 = vector.broadcast %cst_5 : f32 to vector<32x128xf32>
    %16 = arith.addf %15, %8 : vector<32x128xf32>
    %cst_6 = arith.constant 1.000000e+00 : f32
    %17 = vector.broadcast %cst_6 : f32 to vector<32x128xf32>
    %18 = arith.divf %17, %16 : vector<32x128xf32>
    %cst_7 = arith.constant 0.000000e+00 : f32
    %19 = vector.broadcast %cst_7 : f32 to vector<32x128xf32>
    %20 = arith.cmpf oge, %3, %19 : vector<32x128xf32>
    %21 = arith.mulf %8, %18 : vector<32x128xf32>
    %22 = arith.select %20, %18, %21 : vector<32x128xi1>, vector<32x128xf32>
    %23 = arith.addf %22, %4 : vector<32x128xf32>
    %cst_8 = arith.constant 2.000000e+00 : f32
    %24 = vector.broadcast %cst_8 : f32 to vector<32x128xf32>
    %25 = arith.mulf %24, %22 : vector<32x128xf32>
    %26 = arith.mulf %25, %4 : vector<32x128xf32>
    %27 = arith.subf %23, %26 : vector<32x128xf32>
    %28 = arith.mulf %27, %27 : vector<32x128xf32>
    %29 = arith.mulf %14, %28 : vector<32x128xf32>
    %cst_9 = arith.constant -5.000000e-01 : f32
    %30 = vector.broadcast %cst_9 : f32 to vector<32x128xf32>
    %31 = arith.mulf %30, %4 : vector<32x128xf32>
    %cst_10 = arith.constant 7.500000e-01 : f32
    %32 = vector.broadcast %cst_10 : f32 to vector<32x128xf32>
    %33 = arith.addf %32, %31 : vector<32x128xf32>
    %34 = arith.mulf %33, %29 : vector<32x128xf32>
    %c0_11 = arith.constant 0 : index
    %c0_12 = arith.constant 0 : index
    %35 = vector.load %arg5[%c0_11, %c0_12] : memref<8x128xf32, #tpu.memory_space<vmem>>, vector<8x128xf32>
    %36 = vector.shape_cast %34 : vector<32x128xf32> to vector<4x8x128xf32>
    %cst_13 = arith.constant dense<0.000000e+00> : vector<8x128xf32>
    %37 = vector.multi_reduction <add>, %36, %cst_13 [0] : vector<4x8x128xf32> to vector<8x128xf32>
    %38 = arith.addf %35, %37 : vector<8x128xf32>
    %c0_14 = arith.constant 0 : index
    %c0_15 = arith.constant 0 : index
    %39 = vector.load %arg5[%c0_14, %c0_15] : memref<8x128xf32, #tpu.memory_space<vmem>>, vector<8x128xf32>
    tpu.vector_store %arg5[%c0_14, %c0_15], %38 {strides = array<i32>} : memref<8x128xf32, #tpu.memory_space<vmem>>, vector<8x128xf32>,
    %c0_i32_16 = arith.constant 0 : i32
    %40 = arith.cmpi eq, %arg1, %c0_i32_16 : i32
    %41 = arith.extui %40 : i1 to i32
    %c0_i32_17 = arith.constant 0 : i32
    %42 = arith.cmpi ne, %41, %c0_i32_17 : i32
    scf.if %42 {
      %c0_18 = arith.constant 0 : index
      %c0_19 = arith.constant 0 : index
      %43 = vector.load %arg5[%c0_18, %c0_19] : memref<8x128xf32, #tpu.memory_space<vmem>>, vector<8x128xf32>
      %c0_20 = arith.constant 0 : index
      %c0_21 = arith.constant 0 : index
      %c0_22 = arith.constant 0 : index
      %44 = vector.load %arg4[%c0_20, %c0_21, %c0_22] : memref<1x8x128xf32, #tpu.memory_space<vmem>>, vector<1x8x128xf32>
      %45 = vector.shape_cast %44 : vector<1x8x128xf32> to vector<8x128xf32>
      %46 = vector.shape_cast %43 : vector<8x128xf32> to vector<1x8x128xf32>
      tpu.vector_store %arg4[%c0_20, %c0_21, %c0_22], %46 {strides = array<i32>} : memref<1x8x128xf32, #tpu.memory_space<vmem>>, vector<1x8x128xf32>,
    } else {
    }
    return
  }
  func.func @transform_0(%arg0: i32, %arg1: i32) -> (i32, i32) {
    %c1_i32 = arith.constant 1 : i32
    %0 = arith.muli %arg0, %c1_i32 : i32
    %1 = arith.addi %0, %arg1 : i32
    %c0_i32 = arith.constant 0 : i32
    %c0_i32_0 = arith.constant 0 : i32
    return %1, %c0_i32 : i32, i32
  }
  func.func @transform_1(%arg0: i32, %arg1: i32) -> (i32, i32) {
    %c1_i32 = arith.constant 1 : i32
    %0 = arith.muli %arg0, %c1_i32 : i32
    %1 = arith.addi %0, %arg1 : i32
    %c0_i32 = arith.constant 0 : i32
    %c0_i32_0 = arith.constant 0 : i32
    return %1, %c0_i32 : i32, i32
  }
  func.func @transform_2(%arg0: i32, %arg1: i32) -> (i32, i32, i32) {
    %c0_i32 = arith.constant 0 : i32
    %c0_i32_0 = arith.constant 0 : i32
    %c0_i32_1 = arith.constant 0 : i32
    return %arg0, %c0_i32, %c0_i32_0 : i32, i32, i32
  }
}

</mosaic_0001>

<bundles_post_ra>
// kernel: tpu_custom_call.1
= control target key start
LH: loop header
LB: loop body
LE: loop exit
PB: predicated region body
PF: predicated region fallthrough
CT: control target
= control target key end

     0   :  { %7 = vsyncpa [#allocation4], 0  ;;  %s491_s0 = inlined_call_operand.hbm [shape: f32[32,128], index: 0, kind: input, shape index: {}]   ;;  %s492_s1 = inlined_call_operand.hbm [shape: f32[32,128], index: 1, kind: input, shape index: {}]   ;;  %s493_s2 = inlined_call_operand.hbm [shape: f32[1,8,128], index: 2, kind: output, shape index: {}]  }
   0x1   :  { %8 = vsyncpa [#allocation7], 0 }
   0x2   :  { %9 = vsyncpa [#allocation5], 0  ;;  %s321_s9 = smov [#allocation3]   ;;  %s249_s13 = scalar_lea.hbm %s491_s0, 512 }
   0x3   :  { %s19_s10 = sshll.u32 %s321_s9, 4  ;;  %p250_p0 = scmp.ne.s32.totalorder %s491_s0, %s249_s13  ;;  %s20_s10 = int_to_ptr.vmem [resolvable:$true] %s19_s10 }
   0x4   :  { %p253_p1 = scmp.lt.u32.totalorder %s249_s13, %s491_s0 }
   0x6   :  { %p255_p2 = pnand %p253_p1, %p250_p0 }
   0x8   :  { %258 = shalt.err (!%p255_p2)
}
   0x9   :  { %s259_s18 = scalar_lea.vmem %s20_s10, 512  ;;  %p264_p4 = scmp.lt.s32.totalorder %s20_s10, %s20_s10 }
   0xa   :  { %p260_p3 = scmp.ne.s32.totalorder %s20_s10, %s259_s18  ;;  %p265_p5 = scmp.lt.s32.totalorder %s259_s18, %s259_s18 }
   0xc   :  { %p266_p6 = por %p265_p5, %p264_p4 }
   0xe   :  { %p267_p7 = pnand %p266_p6, %p260_p3 }
  0x10   :  { %270 = shalt.err (!%p267_p7)
}
  0x11   :  { %s322_s19 = smov 128   ;;  %s323_s20 = smov 8  }
  0x12   :  { %25 = dma.hbm_to_vmem [thread:$0]  %s491_s0, 512, %s20_s10, [#allocation4], %s322_s19, %s322_s19, %s323_s20  }
  0x13   :  { %s324_s23 = smov [#allocation6]   ;;  %s271_s27 = scalar_lea.hbm %s492_s1, 512 }
  0x14   :  { %s35_s24 = sshll.u32 %s324_s23, 4  ;;  %p272_p8 = scmp.ne.s32.totalorder %s492_s1, %s271_s27  ;;  %s36_s24 = int_to_ptr.vmem [resolvable:$true] %s35_s24 }
  0x15   :  { %p275_p9 = scmp.lt.u32.totalorder %s271_s27, %s492_s1 }
  0x17   :  { %p277_p10 = pnand %p275_p9, %p272_p8 }
  0x19   :  { %280 = shalt.err (!%p277_p10)
}
  0x1a   :  { %s281_s4 = scalar_lea.vmem %s36_s24, 512  ;;  %p286_p12 = scmp.lt.s32.totalorder %s36_s24, %s36_s24 }
  0x1b   :  { %p282_p11 = scmp.ne.s32.totalorder %s36_s24, %s281_s4  ;;  %p287_p13 = scmp.lt.s32.totalorder %s281_s4, %s281_s4 }
  0x1d   :  { %p288_p0 = por %p287_p13, %p286_p12 }
  0x1f   :  { %p289_p1 = pnand %p288_p0, %p282_p11 }
  0x21   :  { %292 = shalt.err (!%p289_p1)
}
  0x22   :  { %41 = dma.hbm_to_vmem [thread:$0]  %s492_s1, 512, %s36_s24, [#allocation7], %s322_s19, %s322_s19, %s323_s20  }
  0x23   :  { %315 = dma.done.wait [#allocation4], 512  }
  0x24   :  { %316 = vsyncadd [#allocation4], 4294966784 }
  0x25   :  { %317 = dma.done.wait [#allocation7], 512  }
  0x26   :  { %318 = vsyncadd [#allocation7], 4294966784  ;;  %v365_v0 = vld [vmem:[#allocation3] sm:$0xff]  ;;  %v367_v1 = vld [vmem:[#allocation3 + $0x8] sm:$0xff]  ;;  %s325_s1 = smov [#allocation8]  }
  0x27   :  { %v369_v2 = vld [vmem:[#allocation3 + $0x10] sm:$0xff]  ;;  %v371_v3 = vld [vmem:[#allocation3 + $0x18] sm:$0xff]  ;;  %v65_v4 = vand.u32 2147483647, %v365_v0  ;;  %v66_v5 = vand.u32 2147483647, %v367_v1 }
  0x28   :  { %v67_v6 = vand.u32 2147483647, %v369_v2  ;;  %v68_v7 = vand.u32 2147483647, %v371_v3  ;;  %v388_v23 = vld [vmem:[#allocation6] sm:$0xff]  ;;  %v390_v24 = vld [vmem:[#allocation6 + $0x8] sm:$0xff] }
  0x29   :  { %v69_v8 = vsub.f32 0.0, %v65_v4  ;;  %v70_v9 = vsub.f32 0.0, %v66_v5  ;;  %v393_v26 = vld [vmem:[#allocation6 + $0x10] sm:$0xff]  ;;  %v395_v27 = vld [vmem:[#allocation6 + $0x18] sm:$0xff]  ;;  %v81_v28 = vmax.f32 %v365_v0, 0.0  ;;  %v85_v29 = vmul.f32 %v388_v23, %v365_v0  ;;  %s210_s6 = sshll.u32 %s325_s1, 4  ;;  %s211_s6 = int_to_ptr.vmem [resolvable:$true] %s210_s6 }
  0x2a   :  { %v71_v10 = vsub.f32 0.0, %v67_v6  ;;  %v72_v11 = vsub.f32 0.0, %v68_v7  ;;  %v86_v30 = vmul.f32 %v390_v24, %v367_v1  ;;  %v82_v32 = vmax.f32 %v367_v1, 0.0  ;;  %s293_s7 = scalar_lea.vmem %s211_s6, 128  ;;  %p298_p3 = scmp.lt.s32.totalorder %s211_s6, %s211_s6 }
  0x2b   :  { %v73_v12 = vmul.f32 1.442695, %v69_v8  ;;  %v75_v13 = vmul.f32 1.442695, %v70_v9  ;;  %v83_v33 = vmax.f32 %v369_v2, 0.0  ;;  %v84_v34 = vmax.f32 %v371_v3, 0.0  ;;  %p294_p2 = scmp.ne.s32.totalorder %s211_s6, %s293_s7  ;;  %p299_p4 = scmp.lt.s32.totalorder %s293_s7, %s293_s7 }
  0x2c   :  { %v77_v14 = vmul.f32 1.442695, %v71_v10  ;;  %v79_v15 = vmul.f32 1.442695, %v72_v11  ;;  %v87_v35 = vmul.f32 %v393_v26, %v369_v2  ;;  %v88_v36 = vmul.f32 %v395_v27, %v371_v3 }
  0x2d   :  { %225 = vpow2.f32 %v73_v12  ;;  %v89_v42 = vsub.f32 %v81_v28, %v85_v29  ;;  %v90_v43 = vsub.f32 %v82_v32, %v86_v30  ;;  %vm145_vm0 = vcmp.ge.f32.partialorder %v365_v0, 0.0  ;;  %p300_p5 = por %p299_p4, %p298_p3 }
  0x2e   :  { %227 = vpow2.f32 %v75_v13  ;;  %v414_v45 = vsub.f32 %v83_v33, %v87_v35  ;;  %v416_v46 = vsub.f32 %v84_v34, %v88_v36  ;;  %vm146_vm1 = vcmp.ge.f32.partialorder %v367_v1, 0.0 }
  0x2f   :  { %229 = vpow2.f32 %v77_v14  ;;  %vm147_vm3 = vcmp.ge.f32.partialorder %v369_v2, 0.0  ;;  %vm148_vm4 = vcmp.ge.f32.partialorder %v371_v3, 0.0  ;;  %v181_v59 = vmul.f32 -0.5, %v388_v23  ;;  %p301_p6 = pnand %p300_p5, %p294_p2 }
  0x30   :  { %231 = vpow2.f32 %v79_v15  ;;  %v182_v63 = vmul.f32 -0.5, %v390_v24  ;;  %v183_v4 = vmul.f32 -0.5, %v393_v26 }
  0x37   :  { %v377_v16 = vpop.eup %225 }
  0x38   :  { %v379_v17 = vpop.eup %227  ;;  %v93_v18 = vadd.f32 1.0, %v377_v16  ;;  %v96_v31 = vmul.f32 -0.5, %v377_v16  ;;  %v99_v44 = vand.u32 2147483647, %v377_v16 }
  0x39   :  { %v382_v19 = vpop.eup %229  ;;  %v102_v21 = vadd.f32 1.0, %v379_v17  ;;  %v105_v37 = vmul.f32 -0.5, %v379_v17  ;;  %v108_v48 = vand.u32 2147483647, %v379_v17 }
  0x3a   :  { %v384_v20 = vpop.eup %231  ;;  %233 = vlog2.f32 %v93_v18  ;;  %v111_v22 = vadd.f32 1.0, %v382_v19  ;;  %v114_v38 = vmul.f32 -0.5, %v382_v19  ;;  %v97_v39 = vadd.f32 1.0, %v96_v31 }
  0x3b   :  { %235 = vlog2.f32 %v102_v21  ;;  %v120_v25 = vadd.f32 1.0, %v384_v20  ;;  %v123_v40 = vmul.f32 -0.5, %v384_v20  ;;  %v106_v47 = vadd.f32 1.0, %v105_v37 }
  0x3c   :  { %237 = vlog2.f32 %v111_v22  ;;  %v115_v50 = vadd.f32 1.0, %v114_v38  ;;  %v117_v51 = vand.u32 2147483647, %v382_v19  ;;  %v98_v54 = vmul.f32 %v377_v16, %v97_v39 }
  0x3d   :  { %239 = vlog2.f32 %v120_v25  ;;  %v124_v55 = vadd.f32 1.0, %v123_v40  ;;  %v126_v56 = vand.u32 2147483647, %v384_v20  ;;  %vm424_vm2 = vcmp.lt.f32.partialorder %v99_v44, 0.0004427343 }
  0x3e   :  { %241 = vrcp.f32 %v93_v18  ;;  %v107_v61 = vmul.f32 %v379_v17, %v106_v47  ;;  %vm432_vm5 = vcmp.lt.f32.partialorder %v108_v48, 0.0004427343  ;;  %v116_v7 = vmul.f32 %v382_v19, %v115_v50 }
  0x3f   :  { %243 = vrcp.f32 %v102_v21  ;;  %vm439_vm6 = vcmp.lt.f32.partialorder %v117_v51, 0.0004427343  ;;  %v125_v12 = vmul.f32 %v384_v20, %v124_v55  ;;  %vm447_vm7 = vcmp.lt.f32.partialorder %v126_v56, 0.0004427343 }
  0x40   :  { %245 = vrcp.f32 %v111_v22  ;;  %v185_v50 = vadd.f32 0.75, %v181_v59 }
  0x41   :  { %247 = vrcp.f32 %v120_v25 }
  0x44   :  { %v234_v41 = vpop.eup %233 }
  0x45   :  { %v236_v49 = vpop.eup %235  ;;  %v95_v53 = vmul.f32 0.6931472, %v234_v41 }
  0x46   :  { %v238_v52 = vpop.eup %237  ;;  %v104_v6 = vmul.f32 0.6931472, %v236_v49 }
  0x47   :  { %v240_v57 = vpop.eup %239  ;;  %v101_v11 = vsel %vm424_vm2, %v98_v54, %v95_v53  ;;  %v113_v18 = vmul.f32 0.6931472, %v238_v52  ;;  %v186_v53 = vadd.f32 0.75, %v182_v63 }
  0x48   :  { %v242_v60 = vpop.eup %241  ;;  %v122_v21 = vmul.f32 0.6931472, %v240_v57  ;;  %v110_v31 = vsel %vm432_vm5, %v107_v61, %v104_v6  ;;  %v129_v38 = vadd.f32 %v101_v11, %v89_v42 }
  0x49   :  { %v244_v5 = vpop.eup %243  ;;  %v149_v9 = vmul.f32 %v242_v60, %v377_v16  ;;  %v119_v34 = vsel %vm439_vm6, %v116_v7, %v113_v18  ;;  %v130_v40 = vadd.f32 %v110_v31, %v90_v43 }
  0x4a   :  { %v246_v10 = vpop.eup %245  ;;  %v150_v14 = vmul.f32 %v244_v5, %v379_v17  ;;  %v128_v37 = vsel %vm447_vm7, %v125_v12, %v122_v21  ;;  %v131_v47 = vadd.f32 %v119_v34, %v414_v45 }
  0x4b   :  { %v248_v15 = vpop.eup %247  ;;  %v151_v22 = vmul.f32 %v246_v10, %v382_v19  ;;  %v153_v16 = vsel %vm145_vm0, %v242_v60, %v149_v9 }
  0x4c   :  { %v152_v25 = vmul.f32 %v248_v15, %v384_v20  ;;  %v154_v28 = vsel %vm146_vm1, %v244_v5, %v150_v14  ;;  %v157_v29 = vadd.f32 %v153_v16, %v388_v23  ;;  %v161_v30 = vmul.f32 2.0, %v153_v16 }
  0x4d   :  { %v155_v17 = vsel %vm147_vm3, %v246_v10, %v151_v22  ;;  %v158_v32 = vadd.f32 %v154_v28, %v390_v24  ;;  %v162_v19 = vmul.f32 2.0, %v154_v28 }
  0x4e   :  { %v156_v0 = vsel %vm148_vm4, %v248_v15, %v152_v25  ;;  %v159_v20 = vadd.f32 %v155_v17, %v393_v26  ;;  %v163_v33 = vmul.f32 2.0, %v155_v17  ;;  %v165_v1 = vmul.f32 %v161_v30, %v388_v23 }
  0x4f   :  { %v160_v35 = vadd.f32 %v156_v0, %v395_v27  ;;  %v164_v36 = vmul.f32 2.0, %v156_v0  ;;  %v166_v2 = vmul.f32 %v162_v19, %v390_v24  ;;  %v184_v23 = vmul.f32 -0.5, %v395_v27 }
  0x50   :  { %v167_v3 = vmul.f32 %v163_v33, %v393_v26  ;;  %v169_v39 = vsub.f32 %v157_v29, %v165_v1  ;;  %v132_v24 = vadd.f32 %v128_v37, %v416_v46  ;;  %v187_v26 = vadd.f32 0.75, %v183_v4 }
  0x51   :  { %v168_v41 = vmul.f32 %v164_v36, %v395_v27  ;;  %v170_v44 = vsub.f32 %v158_v32, %v166_v2  ;;  %v188_v56 = vadd.f32 0.75, %v184_v23 }
  0x52   :  { %v171_v48 = vsub.f32 %v159_v20, %v167_v3  ;;  %v173_v49 = vmul.f32 %v169_v39, %v169_v39 }
  0x53   :  { %v172_v51 = vsub.f32 %v160_v35, %v168_v41  ;;  %v174_v52 = vmul.f32 %v170_v44, %v170_v44 }
  0x54   :  { %v175_v42 = vmul.f32 %v171_v48, %v171_v48  ;;  %v177_v54 = vmul.f32 %v173_v49, %v129_v38 }
  0x55   :  { %v176_v55 = vmul.f32 %v172_v51, %v172_v51  ;;  %v178_v43 = vmul.f32 %v174_v52, %v130_v40 }
  0x56   :  { %v179_v57 = vmul.f32 %v175_v42, %v131_v47  ;;  %v189_v58 = vmul.f32 %v185_v50, %v177_v54 }
  0x57   :  { %v180_v60 = vmul.f32 %v176_v55, %v132_v24  ;;  %v190_v27 = vmul.f32 %v186_v53, %v178_v43 }
  0x58   :  { %v191_v61 = vmul.f32 %v187_v26, %v179_v57 }
  0x59   :  { %v192_v45 = vmul.f32 %v188_v56, %v180_v60  ;;  %v194_v62 = vadd.f32 %v190_v27, %v189_v58 }
  0x5b   :  { %v195_v59 = vadd.f32 %v194_v62, %v191_v61 }
  0x5d   :  { %v196_v46 = vadd.f32 %v195_v59, %v192_v45 }
  0x5f   :  { %203 = vst [vmem:[#allocation8] sm:$0xff] %v196_v46 }
  0x60   :  { %304 = shalt.err (!%p301_p6)
}
  0x61   :  { %s305_s10 = scalar_lea.hbm %s493_s2, 128 }
  0x62   :  { %p306_p7 = scmp.ne.s32.totalorder %s493_s2, %s305_s10  ;;  %p309_p8 = scmp.lt.u32.totalorder %s305_s10, %s493_s2 }
  0x64   :  { %p311_p9 = pnand %p309_p8, %p306_p7 }
  0x66   :  { %314 = shalt.err (!%p311_p9)
}
  0x67   :  { %213 = dma.vmem_to_hbm [thread:$0]  %s211_s6, 128, %s493_s2, [#allocation5]  }
  0x68   :  { %319 = dma.done.wait [#allocation5], 128  }
  0x69   :  { %320 = vsyncadd [#allocation5], 4294967168 }
  0x6a   :  { %217 = vsyncpa [#allocation4], 1 }
  0x6b   :  { %218 = vsyncpa [#allocation7], 1 }
  0x6c   :  { %219 = vsyncpa [#allocation5], 1 }

</bundles_post_ra>
